<compile_context>
chip_gen: v6e
topology: v6e:2x2x1
jax: 0.10.0
libtpu: 0.0.40
codegen_flags: <defaults>
</compile_context>

<pallas_src>
import functools
import math

import jax
import jax.numpy as jnp
import numpy as np
from jax.experimental import pallas as pl
from jax.experimental.pallas import tpu as pltpu

MXU_DTYPE = jnp.bfloat16  # MXU operand dtype; accumulation stays f32.


def cross_attention_kernel(q_ref, x_ref, wq_ref, bq_ref, wk_ref, bk_ref,
                           wv_ref, bv_ref, o_ref, *, num_heads, head_dim):
    f32 = jnp.float32
    scale = 1.0 / math.sqrt(float(head_dim))

    q_in = q_ref[...].astype(MXU_DTYPE)          # (tq, D)
    x_in = x_ref[...].astype(MXU_DTYPE)          # (S,  D)

    # Projections: bf16 MXU operands, f32 accumulation, bias add in f32.
    # (K/V are recomputed per query tile; cheap relative to attention and it
    # keeps everything inside one kernel with only resident BlockSpecs.)
    Q = jnp.dot(q_in, wq_ref[...].astype(MXU_DTYPE),
                preferred_element_type=f32) + bq_ref[...]
    K = jnp.dot(x_in, wk_ref[...].astype(MXU_DTYPE),
                preferred_element_type=f32) + bk_ref[...]
    V = jnp.dot(x_in, wv_ref[...].astype(MXU_DTYPE),
                preferred_element_type=f32) + bv_ref[...]

    # Fold the softmax scale into Q once: one (tq, D) multiply instead of
    # num_heads x (tq, S) multiplies on the score matrices.
    Q = Q * scale

    # Contract the last dim of both operands (A @ B^T without materializing
    # a transpose).
    nt_dims = (((1,), (1,)), ((), ()))

    # Static head loop: num_heads is small (4) so unrolling is fine.
    # TODO(synk): if num_heads grows beyond ~8, move heads to a fori_loop or
    # a grid axis to bound live ranges / vreg pressure.
    outs = []
    for h in range(num_heads):
        lo = h * head_dim
        hi = lo + head_dim
        qh = Q[:, lo:hi].astype(MXU_DTYPE)       # (tq, hd)
        kh = K[:, lo:hi].astype(MXU_DTYPE)       # (S,  hd)
        vh = V[:, lo:hi].astype(MXU_DTYPE)       # (S,  hd)

        # Scores (tq, S): MXU matmul, f32 accumulation, no explicit kh.T.
        s = jax.lax.dot_general(qh, kh, nt_dims, preferred_element_type=f32)

        # Numerically-stable softmax numerator in f32 (VPU/EUP).
        m = jnp.max(s, axis=-1, keepdims=True)
        e = jnp.exp(s - m)                        # (tq, S) f32
        denom = jnp.sum(e, axis=-1, keepdims=True)

        # Unnormalized PV matmul, then normalize the small (tq, hd) result
        # with an approximate EUP reciprocal (instead of dividing (tq, S)).
        pv = jnp.dot(e.astype(MXU_DTYPE), vh, preferred_element_type=f32)
        outs.append(pv * pl.reciprocal(denom, approx=True))

    # One lane-dense store of the full (tq, D) output block.
    o_ref[...] = jnp.concatenate(outs, axis=-1).astype(o_ref.dtype)


def _vmem_limit_bytes(S, D, tq):
    f32 = 4
    tiles = 2 * 2 * (tq * D * f32)                 # q + out tiles, double-buffered
    resident = S * D * f32 + 3 * D * D * f32 + 3 * D * f32
    interm = 4 * S * D * f32 + 4 * tq * S * f32    # Q/K/V + per-head score/exp
    need = 2 * (tiles + resident + interm)         # 2x headroom
    return int(min(48 << 20, max(16 << 20, need)))


def cross_attention(q, x, wq, bq, wk, bk, wv, bv, *, num_heads):
    S, D = q.shape
    head_dim = D // num_heads

    # Query tile: full S for small problems, else 512 rows (multiple of 8).
    tq = S if S <= 512 else 512
    grid = (pl.cdiv(S, tq),)

    kernel = functools.partial(
        cross_attention_kernel, num_heads=num_heads, head_dim=head_dim)

    resident = lambda i: (0, 0)                    # stays in VMEM across tiles
    tiled = lambda i: (i, 0)

    cost = pl.CostEstimate(
        flops=int(6 * S * D * D + 4 * S * S * D),
        transcendentals=int(num_heads * S * S + num_heads * S),
        bytes_accessed=int(4 * (3 * S * D + 3 * D * D + 3 * D)),
    )

    return pl.pallas_call(
        kernel,
        out_shape=jax.ShapeDtypeStruct((S, D), jnp.float32),
        grid=grid,
        in_specs=[
            pl.BlockSpec((tq, D), tiled),          # q: tiled on query rows
            pl.BlockSpec((S, D), resident),        # x
            pl.BlockSpec((D, D), resident),        # W_q
            pl.BlockSpec((1, D), resident),        # b_q
            pl.BlockSpec((D, D), resident),        # W_k
            pl.BlockSpec((1, D), resident),        # b_k
            pl.BlockSpec((D, D), resident),        # W_v
            pl.BlockSpec((1, D), resident),        # b_v
        ],
        out_specs=pl.BlockSpec((tq, D), tiled),
        compiler_params=pltpu.CompilerParams(
            dimension_semantics=("parallel",),
            vmem_limit_bytes=_vmem_limit_bytes(S, D, tq),
        ),
        cost_estimate=cost,
    )(q, x, wq, bq, wk, bk, wv, bv)


def reference(q, x, wq, bq, wk, bk, wv, bv, *, num_heads):
    # Pure-JAX f32 reference mirroring the PyTorch forward exactly.
    S, D = q.shape
    hd = D // num_heads
    Q = q @ wq + bq
    K = x @ wk + bk
    V = x @ wv + bv
    Qh = Q.reshape(S, num_heads, hd).transpose(1, 0, 2)
    Kh = K.reshape(S, num_heads, hd).transpose(1, 0, 2)
    Vh = V.reshape(S, num_heads, hd).transpose(1, 0, 2)
    scores = jnp.einsum("hqd,hkd->hqk", Qh, Kh) / hd ** 0.5
    attn = jax.nn.softmax(scores, axis=-1)
    out = jnp.einsum("hqk,hkd->hqd", attn, Vh)
    return out.transpose(1, 0, 2).reshape(S, D)


if __name__ == "__main__":
    seq_len = 8
    input_dim = 32
    num_heads = 4

    key = jax.random.PRNGKey(0)
    kq, kx, k1, k2, k3, k4, k5, k6 = jax.random.split(key, 8)

    q = jax.random.normal(kq, (seq_len, input_dim), dtype=jnp.float32)
    x = jax.random.normal(kx, (seq_len, input_dim), dtype=jnp.float32)

    # Deterministic parameter init (PyTorch nn.Linear-style uniform bounds).
    bound = 1.0 / np.sqrt(input_dim)

    def init_w(k):  # stored already transposed: (D_in, D_out)
        return jax.random.uniform(k, (input_dim, input_dim), jnp.float32,
                                  -bound, bound)

    def init_b(k):  # stored as (1, D) row for in-kernel broadcast
        return jax.random.uniform(k, (1, input_dim), jnp.float32, -bound, bound)

    wq, bq = init_w(k1), init_b(k2)
    wk, bk = init_w(k3), init_b(k4)
    wv, bv = init_w(k5), init_b(k6)

    out = cross_attention(q, x, wq, bq, wk, bk, wv, bv, num_heads=num_heads)
    out = jax.block_until_ready(out)

    ref = reference(q, x, wq, bq, wk, bk, wv, bv, num_heads=num_heads)
    # Tolerance accounts for bf16 MXU operands (f32 accumulation, f32 softmax).
    np.testing.assert_allclose(np.asarray(out), np.asarray(ref),
                               rtol=5e-2, atol=5e-2)

    print("KERNEL_OK")
</pallas_src>

<mosaic_0001>
module attributes {stable_mosaic.version = 11 : i64} {
  func.func @cross_attention_kernel(%arg0: i32, %arg1: memref<8x32xf32, #tpu.memory_space<vmem>>, %arg2: memref<8x32xf32, #tpu.memory_space<vmem>>, %arg3: memref<32x32xf32, #tpu.memory_space<vmem>>, %arg4: memref<1x32xf32, #tpu.memory_space<vmem>>, %arg5: memref<32x32xf32, #tpu.memory_space<vmem>>, %arg6: memref<1x32xf32, #tpu.memory_space<vmem>>, %arg7: memref<32x32xf32, #tpu.memory_space<vmem>>, %arg8: memref<1x32xf32, #tpu.memory_space<vmem>>, %arg9: memref<8x32xf32, #tpu.memory_space<vmem>>) attributes {dimension_semantics = [#tpu.dimension_semantics<parallel>], iteration_bounds = array<i64: 1>, scalar_prefetch = 0 : i64, scratch_operands = 0 : i64, tpu.core_type = #tpu.core_type<tc>, window_params = [{transform_indices = @transform_0, window_bounds = array<i64: 8, 32>}, {pipeline_mode = #tpu.pipeline_mode<synchronous>, transform_indices = @transform_1, window_bounds = array<i64: 8, 32>}, {pipeline_mode = #tpu.pipeline_mode<synchronous>, transform_indices = @transform_2, window_bounds = array<i64: 32, 32>}, {pipeline_mode = #tpu.pipeline_mode<synchronous>, transform_indices = @transform_3, window_bounds = array<i64: 1, 32>}, {pipeline_mode = #tpu.pipeline_mode<synchronous>, transform_indices = @transform_4, window_bounds = array<i64: 32, 32>}, {pipeline_mode = #tpu.pipeline_mode<synchronous>, transform_indices = @transform_5, window_bounds = array<i64: 1, 32>}, {pipeline_mode = #tpu.pipeline_mode<synchronous>, transform_indices = @transform_6, window_bounds = array<i64: 32, 32>}, {pipeline_mode = #tpu.pipeline_mode<synchronous>, transform_indices = @transform_7, window_bounds = array<i64: 1, 32>}, {transform_indices = @transform_8, window_bounds = array<i64: 8, 32>}]} {
    %c0 = arith.constant 0 : index
    %c0_0 = arith.constant 0 : index
    %0 = vector.load %arg1[%c0, %c0_0] : memref<8x32xf32, #tpu.memory_space<vmem>>, vector<8x32xf32>
    %1 = arith.truncf %0 : vector<8x32xf32> to vector<8x32xbf16>
    %c0_1 = arith.constant 0 : index
    %c0_2 = arith.constant 0 : index
    %2 = vector.load %arg2[%c0_1, %c0_2] : memref<8x32xf32, #tpu.memory_space<vmem>>, vector<8x32xf32>
    %3 = arith.truncf %2 : vector<8x32xf32> to vector<8x32xbf16>
    %c0_3 = arith.constant 0 : index
    %c0_4 = arith.constant 0 : index
    %4 = vector.load %arg3[%c0_3, %c0_4] : memref<32x32xf32, #tpu.memory_space<vmem>>, vector<32x32xf32>
    %5 = arith.truncf %4 : vector<32x32xf32> to vector<32x32xbf16>
    %cst = arith.constant dense<0.000000e+00> : vector<8x32xf32>
    %6 = tpu.matmul %1, %5, %cst {dimension_numbers = #tpu.dot_dimension_numbers<[1], [0], [0], [1], [0, 0, 1, 1], [], []>} : vector<8x32xbf16>, vector<32x32xbf16>, vector<8x32xf32> -> vector<8x32xf32>
    %c0_5 = arith.constant 0 : index
    %c0_6 = arith.constant 0 : index
    %7 = vector.load %arg4[%c0_5, %c0_6] : memref<1x32xf32, #tpu.memory_space<vmem>>, vector<1x32xf32>
    %8 = vector.broadcast %7 : vector<1x32xf32> to vector<8x32xf32>
    %9 = arith.addf %6, %8 : vector<8x32xf32>
    %c0_7 = arith.constant 0 : index
    %c0_8 = arith.constant 0 : index
    %10 = vector.load %arg5[%c0_7, %c0_8] : memref<32x32xf32, #tpu.memory_space<vmem>>, vector<32x32xf32>
    %11 = arith.truncf %10 : vector<32x32xf32> to vector<32x32xbf16>
    %cst_9 = arith.constant dense<0.000000e+00> : vector<8x32xf32>
    %12 = tpu.matmul %3, %11, %cst_9 {dimension_numbers = #tpu.dot_dimension_numbers<[1], [0], [0], [1], [0, 0, 1, 1], [], []>} : vector<8x32xbf16>, vector<32x32xbf16>, vector<8x32xf32> -> vector<8x32xf32>
    %c0_10 = arith.constant 0 : index
    %c0_11 = arith.constant 0 : index
    %13 = vector.load %arg6[%c0_10, %c0_11] : memref<1x32xf32, #tpu.memory_space<vmem>>, vector<1x32xf32>
    %14 = vector.broadcast %13 : vector<1x32xf32> to vector<8x32xf32>
    %15 = arith.addf %12, %14 : vector<8x32xf32>
    %c0_12 = arith.constant 0 : index
    %c0_13 = arith.constant 0 : index
    %16 = vector.load %arg7[%c0_12, %c0_13] : memref<32x32xf32, #tpu.memory_space<vmem>>, vector<32x32xf32>
    %17 = arith.truncf %16 : vector<32x32xf32> to vector<32x32xbf16>
    %cst_14 = arith.constant dense<0.000000e+00> : vector<8x32xf32>
    %18 = tpu.matmul %3, %17, %cst_14 {dimension_numbers = #tpu.dot_dimension_numbers<[1], [0], [0], [1], [0, 0, 1, 1], [], []>} : vector<8x32xbf16>, vector<32x32xbf16>, vector<8x32xf32> -> vector<8x32xf32>
    %c0_15 = arith.constant 0 : index
    %c0_16 = arith.constant 0 : index
    %19 = vector.load %arg8[%c0_15, %c0_16] : memref<1x32xf32, #tpu.memory_space<vmem>>, vector<1x32xf32>
    %20 = vector.broadcast %19 : vector<1x32xf32> to vector<8x32xf32>
    %21 = arith.addf %18, %20 : vector<8x32xf32>
    %cst_17 = arith.constant 0.353553385 : f32
    %22 = vector.broadcast %cst_17 : f32 to vector<8x32xf32>
    %23 = arith.mulf %9, %22 : vector<8x32xf32>
    %24 = vector.extract_strided_slice %23 {offsets = [0, 0], sizes = [8, 8], strides = [1, 1]} : vector<8x32xf32> to vector<8x8xf32>
    %25 = arith.truncf %24 : vector<8x8xf32> to vector<8x8xbf16>
    %26 = vector.extract_strided_slice %15 {offsets = [0, 0], sizes = [8, 8], strides = [1, 1]} : vector<8x32xf32> to vector<8x8xf32>
    %27 = arith.truncf %26 : vector<8x8xf32> to vector<8x8xbf16>
    %28 = vector.extract_strided_slice %21 {offsets = [0, 0], sizes = [8, 8], strides = [1, 1]} : vector<8x32xf32> to vector<8x8xf32>
    %29 = arith.truncf %28 : vector<8x8xf32> to vector<8x8xbf16>
    %cst_18 = arith.constant dense<0.000000e+00> : vector<8x8xf32>
    %30 = tpu.matmul %25, %27, %cst_18 {dimension_numbers = #tpu.dot_dimension_numbers<[1], [1], [0], [0], [0, 0, 1, 0], [], []>} : vector<8x8xbf16>, vector<8x8xbf16>, vector<8x8xf32> -> vector<8x8xf32>
    %cst_19 = arith.constant dense<0xFF800000> : vector<8xf32>
    %31 = vector.multi_reduction <maximumf>, %30, %cst_19 [1] : vector<8x8xf32> to vector<8xf32>
    %32 = vector.shape_cast %31 : vector<8xf32> to vector<8x1xf32>
    %33 = vector.broadcast %32 : vector<8x1xf32> to vector<8x8xf32>
    %34 = arith.subf %30, %33 : vector<8x8xf32>
    %35 = math.exp %34 : vector<8x8xf32>
    %cst_20 = arith.constant dense<0.000000e+00> : vector<8xf32>
    %36 = vector.multi_reduction <add>, %35, %cst_20 [1] : vector<8x8xf32> to vector<8xf32>
    %37 = vector.shape_cast %36 : vector<8xf32> to vector<8x1xf32>
    %38 = arith.truncf %35 : vector<8x8xf32> to vector<8x8xbf16>
    %cst_21 = arith.constant dense<0.000000e+00> : vector<8x8xf32>
    %39 = tpu.matmul %38, %29, %cst_21 {dimension_numbers = #tpu.dot_dimension_numbers<[1], [0], [0], [1], [0, 0, 1, 1], [], []>} : vector<8x8xbf16>, vector<8x8xbf16>, vector<8x8xf32> -> vector<8x8xf32>
    %40 = tpu.reciprocal %37 {approx = true} : vector<8x1xf32> -> vector<8x1xf32>
    %41 = vector.broadcast %40 : vector<8x1xf32> to vector<8x8xf32>
    %42 = arith.mulf %39, %41 : vector<8x8xf32>
    %43 = vector.extract_strided_slice %23 {offsets = [0, 8], sizes = [8, 8], strides = [1, 1]} : vector<8x32xf32> to vector<8x8xf32>
    %44 = arith.truncf %43 : vector<8x8xf32> to vector<8x8xbf16>
    %45 = vector.extract_strided_slice %15 {offsets = [0, 8], sizes = [8, 8], strides = [1, 1]} : vector<8x32xf32> to vector<8x8xf32>
    %46 = arith.truncf %45 : vector<8x8xf32> to vector<8x8xbf16>
    %47 = vector.extract_strided_slice %21 {offsets = [0, 8], sizes = [8, 8], strides = [1, 1]} : vector<8x32xf32> to vector<8x8xf32>
    %48 = arith.truncf %47 : vector<8x8xf32> to vector<8x8xbf16>
    %cst_22 = arith.constant dense<0.000000e+00> : vector<8x8xf32>
    %49 = tpu.matmul %44, %46, %cst_22 {dimension_numbers = #tpu.dot_dimension_numbers<[1], [1], [0], [0], [0, 0, 1, 0], [], []>} : vector<8x8xbf16>, vector<8x8xbf16>, vector<8x8xf32> -> vector<8x8xf32>
    %cst_23 = arith.constant dense<0xFF800000> : vector<8xf32>
    %50 = vector.multi_reduction <maximumf>, %49, %cst_23 [1] : vector<8x8xf32> to vector<8xf32>
    %51 = vector.shape_cast %50 : vector<8xf32> to vector<8x1xf32>
    %52 = vector.broadcast %51 : vector<8x1xf32> to vector<8x8xf32>
    %53 = arith.subf %49, %52 : vector<8x8xf32>
    %54 = math.exp %53 : vector<8x8xf32>
    %cst_24 = arith.constant dense<0.000000e+00> : vector<8xf32>
    %55 = vector.multi_reduction <add>, %54, %cst_24 [1] : vector<8x8xf32> to vector<8xf32>
    %56 = vector.shape_cast %55 : vector<8xf32> to vector<8x1xf32>
    %57 = arith.truncf %54 : vector<8x8xf32> to vector<8x8xbf16>
    %cst_25 = arith.constant dense<0.000000e+00> : vector<8x8xf32>
    %58 = tpu.matmul %57, %48, %cst_25 {dimension_numbers = #tpu.dot_dimension_numbers<[1], [0], [0], [1], [0, 0, 1, 1], [], []>} : vector<8x8xbf16>, vector<8x8xbf16>, vector<8x8xf32> -> vector<8x8xf32>
    %59 = tpu.reciprocal %56 {approx = true} : vector<8x1xf32> -> vector<8x1xf32>
    %60 = vector.broadcast %59 : vector<8x1xf32> to vector<8x8xf32>
    %61 = arith.mulf %58, %60 : vector<8x8xf32>
    %62 = vector.extract_strided_slice %23 {offsets = [0, 16], sizes = [8, 8], strides = [1, 1]} : vector<8x32xf32> to vector<8x8xf32>
    %63 = arith.truncf %62 : vector<8x8xf32> to vector<8x8xbf16>
    %64 = vector.extract_strided_slice %15 {offsets = [0, 16], sizes = [8, 8], strides = [1, 1]} : vector<8x32xf32> to vector<8x8xf32>
    %65 = arith.truncf %64 : vector<8x8xf32> to vector<8x8xbf16>
    %66 = vector.extract_strided_slice %21 {offsets = [0, 16], sizes = [8, 8], strides = [1, 1]} : vector<8x32xf32> to vector<8x8xf32>
    %67 = arith.truncf %66 : vector<8x8xf32> to vector<8x8xbf16>
    %cst_26 = arith.constant dense<0.000000e+00> : vector<8x8xf32>
    %68 = tpu.matmul %63, %65, %cst_26 {dimension_numbers = #tpu.dot_dimension_numbers<[1], [1], [0], [0], [0, 0, 1, 0], [], []>} : vector<8x8xbf16>, vector<8x8xbf16>, vector<8x8xf32> -> vector<8x8xf32>
    %cst_27 = arith.constant dense<0xFF800000> : vector<8xf32>
    %69 = vector.multi_reduction <maximumf>, %68, %cst_27 [1] : vector<8x8xf32> to vector<8xf32>
    %70 = vector.shape_cast %69 : vector<8xf32> to vector<8x1xf32>
    %71 = vector.broadcast %70 : vector<8x1xf32> to vector<8x8xf32>
    %72 = arith.subf %68, %71 : vector<8x8xf32>
    %73 = math.exp %72 : vector<8x8xf32>
    %cst_28 = arith.constant dense<0.000000e+00> : vector<8xf32>
    %74 = vector.multi_reduction <add>, %73, %cst_28 [1] : vector<8x8xf32> to vector<8xf32>
    %75 = vector.shape_cast %74 : vector<8xf32> to vector<8x1xf32>
    %76 = arith.truncf %73 : vector<8x8xf32> to vector<8x8xbf16>
    %cst_29 = arith.constant dense<0.000000e+00> : vector<8x8xf32>
    %77 = tpu.matmul %76, %67, %cst_29 {dimension_numbers = #tpu.dot_dimension_numbers<[1], [0], [0], [1], [0, 0, 1, 1], [], []>} : vector<8x8xbf16>, vector<8x8xbf16>, vector<8x8xf32> -> vector<8x8xf32>
    %78 = tpu.reciprocal %75 {approx = true} : vector<8x1xf32> -> vector<8x1xf32>
    %79 = vector.broadcast %78 : vector<8x1xf32> to vector<8x8xf32>
    %80 = arith.mulf %77, %79 : vector<8x8xf32>
    %81 = vector.extract_strided_slice %23 {offsets = [0, 24], sizes = [8, 8], strides = [1, 1]} : vector<8x32xf32> to vector<8x8xf32>
    %82 = arith.truncf %81 : vector<8x8xf32> to vector<8x8xbf16>
    %83 = vector.extract_strided_slice %15 {offsets = [0, 24], sizes = [8, 8], strides = [1, 1]} : vector<8x32xf32> to vector<8x8xf32>
    %84 = arith.truncf %83 : vector<8x8xf32> to vector<8x8xbf16>
    %85 = vector.extract_strided_slice %21 {offsets = [0, 24], sizes = [8, 8], strides = [1, 1]} : vector<8x32xf32> to vector<8x8xf32>
    %86 = arith.truncf %85 : vector<8x8xf32> to vector<8x8xbf16>
    %cst_30 = arith.constant dense<0.000000e+00> : vector<8x8xf32>
    %87 = tpu.matmul %82, %84, %cst_30 {dimension_numbers = #tpu.dot_dimension_numbers<[1], [1], [0], [0], [0, 0, 1, 0], [], []>} : vector<8x8xbf16>, vector<8x8xbf16>, vector<8x8xf32> -> vector<8x8xf32>
    %cst_31 = arith.constant dense<0xFF800000> : vector<8xf32>
    %88 = vector.multi_reduction <maximumf>, %87, %cst_31 [1] : vector<8x8xf32> to vector<8xf32>
    %89 = vector.shape_cast %88 : vector<8xf32> to vector<8x1xf32>
    %90 = vector.broadcast %89 : vector<8x1xf32> to vector<8x8xf32>
    %91 = arith.subf %87, %90 : vector<8x8xf32>
    %92 = math.exp %91 : vector<8x8xf32>
    %cst_32 = arith.constant dense<0.000000e+00> : vector<8xf32>
    %93 = vector.multi_reduction <add>, %92, %cst_32 [1] : vector<8x8xf32> to vector<8xf32>
    %94 = vector.shape_cast %93 : vector<8xf32> to vector<8x1xf32>
    %95 = arith.truncf %92 : vector<8x8xf32> to vector<8x8xbf16>
    %cst_33 = arith.constant dense<0.000000e+00> : vector<8x8xf32>
    %96 = tpu.matmul %95, %86, %cst_33 {dimension_numbers = #tpu.dot_dimension_numbers<[1], [0], [0], [1], [0, 0, 1, 1], [], []>} : vector<8x8xbf16>, vector<8x8xbf16>, vector<8x8xf32> -> vector<8x8xf32>
    %97 = tpu.reciprocal %94 {approx = true} : vector<8x1xf32> -> vector<8x1xf32>
    %98 = vector.broadcast %97 : vector<8x1xf32> to vector<8x8xf32>
    %99 = arith.mulf %96, %98 : vector<8x8xf32>
    %100 = tpu.concatenate %42, %61, %80, %99 in 1 : vector<8x8xf32>, vector<8x8xf32>, vector<8x8xf32>, vector<8x8xf32> -> vector<8x32xf32>
    %c0_34 = arith.constant 0 : index
    %c0_35 = arith.constant 0 : index
    %101 = vector.load %arg9[%c0_34, %c0_35] : memref<8x32xf32, #tpu.memory_space<vmem>>, vector<8x32xf32>
    tpu.vector_store %arg9[%c0_34, %c0_35], %100 {strides = array<i32>} : memref<8x32xf32, #tpu.memory_space<vmem>>, vector<8x32xf32>,
    return
  }
  func.func @transform_0(%arg0: i32) -> (i32, i32) {
    %c0_i32 = arith.constant 0 : i32
    %c0_i32_0 = arith.constant 0 : i32
    return %arg0, %c0_i32 : i32, i32
  }
  func.func @transform_1(%arg0: i32) -> (i32, i32) {
    %c0_i32 = arith.constant 0 : i32
    %c0_i32_0 = arith.constant 0 : i32
    %c0_i32_1 = arith.constant 0 : i32
    return %c0_i32, %c0_i32_0 : i32, i32
  }
  func.func @transform_2(%arg0: i32) -> (i32, i32) {
    %c0_i32 = arith.constant 0 : i32
    %c0_i32_0 = arith.constant 0 : i32
    %c0_i32_1 = arith.constant 0 : i32
    return %c0_i32, %c0_i32_0 : i32, i32
  }
  func.func @transform_3(%arg0: i32) -> (i32, i32) {
    %c0_i32 = arith.constant 0 : i32
    %c0_i32_0 = arith.constant 0 : i32
    %c0_i32_1 = arith.constant 0 : i32
    return %c0_i32, %c0_i32_0 : i32, i32
  }
  func.func @transform_4(%arg0: i32) -> (i32, i32) {
    %c0_i32 = arith.constant 0 : i32
    %c0_i32_0 = arith.constant 0 : i32
    %c0_i32_1 = arith.constant 0 : i32
    return %c0_i32, %c0_i32_0 : i32, i32
  }
  func.func @transform_5(%arg0: i32) -> (i32, i32) {
    %c0_i32 = arith.constant 0 : i32
    %c0_i32_0 = arith.constant 0 : i32
    %c0_i32_1 = arith.constant 0 : i32
    return %c0_i32, %c0_i32_0 : i32, i32
  }
  func.func @transform_6(%arg0: i32) -> (i32, i32) {
    %c0_i32 = arith.constant 0 : i32
    %c0_i32_0 = arith.constant 0 : i32
    %c0_i32_1 = arith.constant 0 : i32
    return %c0_i32, %c0_i32_0 : i32, i32
  }
  func.func @transform_7(%arg0: i32) -> (i32, i32) {
    %c0_i32 = arith.constant 0 : i32
    %c0_i32_0 = arith.constant 0 : i32
    %c0_i32_1 = arith.constant 0 : i32
    return %c0_i32, %c0_i32_0 : i32, i32
  }
  func.func @transform_8(%arg0: i32) -> (i32, i32) {
    %c0_i32 = arith.constant 0 : i32
    %c0_i32_0 = arith.constant 0 : i32
    return %arg0, %c0_i32 : i32, i32
  }
}

</mosaic_0001>

<bundles_post_ra>
// kernel: tpu_custom_call.1
= control target key start
LH: loop header
LB: loop body
LE: loop exit
PB: predicated region body
PF: predicated region fallthrough
CT: control target
= control target key end

     0   :  { %13 = vsyncpa [#allocation3], 0  ;;  %s1184_s0 = inlined_call_operand.hbm [shape: f32[8,32], index: 0, kind: input, shape index: {}]   ;;  %s1185_s1 = inlined_call_operand.hbm [shape: f32[8,32], index: 1, kind: input, shape index: {}]   ;;  %s1186_s2 = inlined_call_operand.hbm [shape: f32[32,32], index: 2, kind: input, shape index: {}]   ;;  %s1187_s3 = inlined_call_operand.vmem [shape: f32[1,32], index: 3, kind: input, shape index: {}]   ;;  %s1188_s4 = inlined_call_operand.hbm [shape: f32[32,32], index: 4, kind: input, shape index: {}]   ;;  %s1189_s5 = inlined_call_operand.vmem [shape: f32[1,32], index: 5, kind: input, shape index: {}]   ;;  %s1190_s6 = inlined_call_operand.hbm [shape: f32[32,32], index: 6, kind: input, shape index: {}]   ;;  %s1191_s7 = inlined_call_operand.vmem [shape: f32[1,32], index: 7, kind: input, shape index: {}]   ;;  %s1192_s8 = inlined_call_operand.hbm [shape: f32[8,32], index: 8, kind: output, shape index: {}]  }
   0x1   :  { %14 = vsyncpa [#allocation6], 0 }
   0x2   :  { %15 = vsyncpa [#allocation9], 0 }
   0x3   :  { %16 = vsyncpa [#allocation4], 0  ;;  %s1013_s27 = smov [#allocation5]  }
   0x4   :  { %s33_s28 = sshll.u32 %s1013_s27, 4  ;;  %s34_s28 = int_to_ptr.vmem [resolvable:$true] %s33_s28 }
   0x5   :  { %s893_s29 = scalar_lea.vmem %s34_s28, 128  ;;  %p898_p1 = scmp.lt.s32.totalorder %s34_s28, %s34_s28 }
   0x6   :  { %p894_p0 = scmp.ne.s32.totalorder %s34_s28, %s893_s29  ;;  %p899_p2 = scmp.lt.s32.totalorder %s893_s29, %s893_s29 }
   0x8   :  { %p900_p3 = por %p899_p2, %p898_p1 }
   0xa   :  { %p901_p4 = pnand %p900_p3, %p894_p0 }
   0xc   :  { %904 = shalt.err (!%p901_p4)
}
   0xd   :  { %36 = dma.hbm_to_vmem [thread:$0]  %s1185_s1, 128, %s34_s28, [#allocation6]  }
   0xe   :  { %s1014_s10 = smov [#allocation8]   ;;  %s1015_s12 = smov [#allocation2]  }
   0xf   :  { %s56_s11 = sshll.u32 %s1014_s10, 4  ;;  %s23_s13 = sshll.u32 %s1015_s12, 4  ;;  %s57_s11 = int_to_ptr.vmem [resolvable:$true] %s56_s11  ;;  %s24_s13 = int_to_ptr.vmem [resolvable:$true] %s23_s13 }
  0x10   :  { %s913_s14 = scalar_lea.vmem %s57_s11, 512  ;;  %p918_p6 = scmp.lt.s32.totalorder %s57_s11, %s57_s11 }
  0x11   :  { %p914_p5 = scmp.ne.s32.totalorder %s57_s11, %s913_s14  ;;  %p919_p7 = scmp.lt.s32.totalorder %s913_s14, %s913_s14 }
  0x13   :  { %p920_p8 = por %p919_p7, %p918_p6 }
  0x15   :  { %p921_p9 = pnand %p920_p8, %p914_p5 }
  0x17   :  { %924 = shalt.err (!%p921_p9)
}
  0x18   :  { %s1016_s15 = smov 128   ;;  %s1017_s16 = smov 8  }
  0x19   :  { %62 = dma.hbm_to_vmem [thread:$0]  %s1188_s4, 512, %s57_s11, [#allocation9], %s1016_s15, %s1016_s15, %s1017_s16  }
  0x1a   :  { %s933_s1 = scalar_lea.vmem %s24_s13, 128  ;;  %p938_p11 = scmp.lt.s32.totalorder %s24_s13, %s24_s13 }
  0x1b   :  { %p934_p10 = scmp.ne.s32.totalorder %s24_s13, %s933_s1  ;;  %p939_p12 = scmp.lt.s32.totalorder %s933_s1, %s933_s1 }
  0x1d   :  { %p940_p13 = por %p939_p12, %p938_p11 }
  0x1f   :  { %p941_p0 = pnand %p940_p13, %p934_p10 }
  0x21   :  { %944 = shalt.err (!%p941_p0)
}
  0x22   :  { %26 = dma.hbm_to_vmem [thread:$0]  %s1184_s0, 128, %s24_s13, [#allocation3]  }
  0x23   :  { %s1018_s21 = smov [#allocation7]   ;;  %s1019_s23 = smov [#allocation10]  }
  0x24   :  { %s42_s22 = sshll.u32 %s1018_s21, 4  ;;  %s70_s24 = sshll.u32 %s1019_s23, 4  ;;  %s43_s22 = int_to_ptr.vmem [resolvable:$true] %s42_s22  ;;  %s71_s24 = int_to_ptr.vmem [resolvable:$true] %s70_s24 }
  0x25   :  { %s953_s25 = scalar_lea.vmem %s43_s22, 512  ;;  %p958_p2 = scmp.lt.s32.totalorder %s43_s22, %s43_s22 }
  0x26   :  { %p954_p1 = scmp.ne.s32.totalorder %s43_s22, %s953_s25  ;;  %p959_p3 = scmp.lt.s32.totalorder %s953_s25, %s953_s25 }
  0x28   :  { %p960_p4 = por %p959_p3, %p958_p2 }
  0x2a   :  { %p961_p5 = pnand %p960_p4, %p954_p1 }
  0x2c   :  { %964 = shalt.err (!%p961_p5)
}
  0x2d   :  { %48 = dma.hbm_to_vmem [thread:$0]  %s1186_s2, 512, %s43_s22, [#allocation6], %s1016_s15, %s1016_s15, %s1017_s16  }
  0x2e   :  { %s973_s0 = scalar_lea.vmem %s71_s24, 512  ;;  %p978_p7 = scmp.lt.s32.totalorder %s71_s24, %s71_s24 }
  0x2f   :  { %p974_p6 = scmp.ne.s32.totalorder %s71_s24, %s973_s0  ;;  %p979_p8 = scmp.lt.s32.totalorder %s973_s0, %s973_s0 }
  0x31   :  { %p980_p9 = por %p979_p8, %p978_p7 }
  0x33   :  { %p981_p10 = pnand %p980_p9, %p974_p6 }
  0x35   :  { %984 = shalt.err (!%p981_p10)
}
  0x36   :  { %76 = dma.hbm_to_vmem [thread:$0]  %s1190_s6, 512, %s71_s24, [#allocation9], %s1016_s15, %s1016_s15, %s1017_s16  }
  0x37   :  { %1005 = dma.done.wait [#allocation3], 128  }
  0x38   :  { %1006 = vsyncadd [#allocation3], 4294967168 }
  0x39   :  { %1007 = dma.done.wait [#allocation6], 640  }
  0x3a   :  { %1008 = vsyncadd [#allocation6], 4294966656 }
  0x3b   :  { %1009 = dma.done.wait [#allocation9], 1024  }
  0x3c   :  { %1010 = vsyncadd [#allocation9], 4294966272  ;;  %v1020_v0 = vmov 0.0   ;;  %vm1021_vm0 = vmmov 0   ;;  %v101_v1 = vld [vmem:[#allocation7 + $0x10] sm:$0xff]  ;;  %v102_v2 = vld [vmem:[#allocation7 + $0x18] sm:$0xff] }
  0x3d   :  { %782 = vmatprep.subr.bf16.mxu0 %v1020_v0  ;;  %790 = vmatprep.subr.bf16.mxu1 %v1020_v0  ;;  %v158_v3 = vld [vmem:[#allocation8 + $0x10] sm:$0xff]  ;;  %v104_v4 = vpack.c.bf16 %v102_v2, %v101_v1  ;;  %v159_v5 = vld [vmem:[#allocation8 + $0x18] sm:$0xff]  ;;  %v99_v6 = vld [vmem:[#allocation7] sm:$0xff]  ;;  %vm112_vm1 = vcmask 261120   ;;  %vm269_vm2 = vcmask 64512   ;;  %s1022_s9 = smov 112  }
  0x3e   :  { %786 = vmatprep.mubr.msk.bf16.mxu0 %vm1021_vm0, %v1020_v0  ;;  %794 = vmatprep.mubr.msk.bf16.mxu1 %vm1021_vm0, %v1020_v0  ;;  %v100_v7 = vld [vmem:[#allocation7 + $0x8] sm:$0xff]  ;;  %v161_v8 = vpack.c.bf16 %v159_v5, %v158_v3  ;;  %v156_v9 = vld [vmem:[#allocation8] sm:$0xff]  ;;  %v95_v12 = vld [vmem:[#allocation2] sm:$0xff]  ;;  %vm329_vm3 = vcmask 1043456   ;;  %s1026_s12 = smov 24   ;;  %vm721_vm4 = vcmask 130048  }
  0x3f   :  { %v157_v10 = vld [vmem:[#allocation8 + $0x8] sm:$0xff]  ;;  %783 = vmatpush3.bf16.msra.mxu0 %v104_v4  ;;  %v103_v11 = vpack.c.bf16 %v100_v7, %v99_v6  ;;  %v97_v14 = vld [vmem:[#allocation5] sm:$0xff]  ;;  %v96_v15 = vpack.c.bf16 %v95_v12, %v95_v12  ;;  %v743_v17 = vld [vmem:[%s1187_s3] ss:$0 sm:$0xff]  ;;  %s1023_s3 = smov 120   ;;  %s1027_s13 = smov [#allocation11]  }
  0x40   :  { %791 = vmatpush3.bf16.msra.mxu1 %v161_v8  ;;  %784 = vmatprep.subr.bf16.mxu0 %v1020_v0  ;;  %v160_v13 = vpack.c.bf16 %v157_v10, %v156_v9  ;;  %v98_v16 = vpack.c.bf16 %v97_v14, %v97_v14  ;;  %v745_v18 = vld [vmem:[%s1189_s5] ss:$0 sm:$0xff]  ;;  %s1024_s5 = smov 104   ;;  %v215_v34 = vld [vmem:[#allocation10 + $0x18] sm:$0xff]  ;;  %v212_v35 = vld [vmem:[#allocation10] sm:$0xff]  ;;  %s732_s14 = sshll.u32 %s1027_s13, 4  ;;  %s733_s14 = int_to_ptr.vmem [resolvable:$true] %s732_s14 }
  0x41   :  { %792 = vmatprep.subr.bf16.mxu1 %v1020_v0  ;;  %v214_v33 = vld [vmem:[#allocation10 + $0x10] sm:$0xff]  ;;  %v213_v37 = vld [vmem:[#allocation10 + $0x8] sm:$0xff]  ;;  %vm723_vm5 = vcmask 195584   ;;  %s985_s15 = scalar_lea.vmem %s733_s14, 128  ;;  %p990_p12 = scmp.lt.s32.totalorder %s733_s14, %s733_s14 }
  0x42   :  { %v217_v36 = vpack.c.bf16 %v215_v34, %v214_v33  ;;  %v216_v38 = vpack.c.bf16 %v213_v37, %v212_v35  ;;  %v747_v53 = vld [vmem:[%s1191_s7] ss:$0 sm:$0xff]  ;;  %s1025_s7 = smov 16   ;;  %p986_p11 = scmp.ne.s32.totalorder %s733_s14, %s985_s15 }
  0x43   :  { %785 = vmatpush3.bf16.msra.mxu0 %v103_v11  ;;  %p991_p13 = scmp.lt.s32.totalorder %s985_s15, %s985_s15 }
  0x44   :  { %793 = vmatpush3.bf16.msra.mxu1 %v160_v13  ;;  %798 = vmatprep.subr.bf16.mxu0 %v1020_v0 }
  0x45   :  { %806 = vmatprep.subr.bf16.mxu1 %v1020_v0  ;;  %p992_p0 = por %p991_p13, %p990_p12 }
  0x46   :  { %787 = vmatmul.mubr.msk.bf16.vlgmr.msra.gmra.mxu0 %vm112_vm1, %v96_v15 }
  0x47   :  { %795 = vmatmul.mubr.msk.bf16.vlgmr.msra.gmra.mxu1 %vm112_vm1, %v98_v16  ;;  %802 = vmatprep.mubr.msk.bf16.mxu0 %vm1021_vm0, %v1020_v0  ;;  %p993_p1 = pnand %p992_p0, %p986_p11 }
  0x48   :  { %808 = vmatprep.mubr.msk.bf16.mxu1 %vm1021_vm0, %v1020_v0  ;;  %799 = vmatpush3.bf16.msra.mxu0 %v217_v36 }
  0x49   :  { %800 = vmatprep.subr.bf16.mxu0 %v1020_v0 }
  0x4c   :  { %801 = vmatpush3.bf16.msra.mxu0 %v216_v38 }
  0x4d   :  { %812 = vmatprep.subr.bf16.mxu0 %v1020_v0 }
  0x4f   :  { %803 = vmatmul.mubr.msk.bf16.vlgmr.msra.gmra.mxu0 %vm112_vm1, %v98_v16 }
  0x50   :  { %814 = vmatprep.mubr.msk.bf16.mxu0 %vm1021_vm0, %v1020_v0 }
 0x106   :  { %v150_v19 = vpop.f32.mrf.mxu0 }
 0x107   :  { %v151_v20 = vadd.f32 %v743_v17, %v150_v19  ;;  %v206_v21 = vpop.f32.mrf.mxu1 }
 0x108   :  { %v207_v22 = vadd.f32 %v745_v18, %v206_v21  ;;  %v788_v23 = vpop.f32.mrf.mxu0 }
 0x109   :  { %v265_v24 = vmul.f32 0.35355338, %v151_v20  ;;  %v796_v25 = vpop.f32.mrf.mxu1 }
 0x10a   :  { %v267_v26 = vpack.c.bf16 %v207_v22, %v207_v22  ;;  %v153_v27 = vpop.f32.mrf.mxu0 }
 0x10b   :  { %v209_v28 = vpop.f32.mrf.mxu1  ;;  %v266_v29 = vpack.c.bf16 %v265_v24, %v265_v24 }
 0x10c   :  { %490 = vrot.lane.b32.xlu1 %v267_v26, %s1022_s9  ;;  %379 = vrot.lane.b32.xlu0 %v267_v26, %s1023_s3  ;;  %v789_v30 = vpop.f32.mrf.mxu0  ;;  %v274_v31 = vsel %vm269_vm2, %v267_v26, 0 }
 0x10d   :  { %v797_v32 = vpop.f32.mrf.mxu1  ;;  %807 = vmatpush3.bf16.xpose.msra.mxu1 %v274_v31 }
 0x10e   :  { %818 = vmatprep.subr.bf16.mxu1 %v1020_v0 }
 0x10f   :  { %v259_v54 = vpop.f32.mrf.mxu0 }
 0x110   :  { %488 = vrot.lane.b32.xlu1 %v266_v29, %s1022_s9  ;;  %376 = vrot.lane.b32.xlu0 %v266_v29, %s1023_s3  ;;  %v260_v55 = vadd.f32 %v747_v53, %v259_v54 }
 0x111   :  { %v804_v56 = vpop.f32.mrf.mxu0 }
 0x112   :  { %v268_v57 = vpack.c.bf16 %v260_v55, %v260_v55 }
 0x113   :  { %v262_v58 = vpop.f32.mrf.mxu0 }
 0x114   :  { %598 = vrot.lane.b32.xlu1 %v266_v29, %s1024_s5  ;;  %600 = vrot.lane.b32.xlu0 %v267_v26, %s1024_s5  ;;  %v331_v59 = vsel %vm329_vm3, %v268_v57, 0 }
 0x115   :  { %809 = vmatmul.mubr.msk.bf16.vlgmr.msra.gmra.mxu1 %vm269_vm2, %v266_v29  ;;  %v805_v60 = vpop.f32.mrf.mxu0  ;;  %813 = vmatpush3.bf16.msra.mxu0 %v331_v59 }
 0x116   :  { %820 = vmatprep.mubr.msk.bf16.mxu1 %vm1021_vm0, %v1020_v0  ;;  %824 = vmatprep.subr.bf16.mxu0 %v1020_v0 }
 0x17e   :  { %v380_v39 = vpop.permute.xlu0 %379  ;;  %v491_v41 = vpop.permute.xlu1 %490 }
 0x17f   :  { %v385_v40 = vsel %vm269_vm2, %v380_v39, 0  ;;  %v496_v43 = vsel %vm269_vm2, %v491_v41, 0 }
 0x180   :  { %819 = vmatpush3.bf16.xpose.msra.mxu1 %v385_v40 }
 0x181   :  { %830 = vmatprep.subr.bf16.mxu1 %v1020_v0 }
 0x182   :  { %v377_v42 = vpop.permute.xlu0 %376  ;;  %v489_v45 = vpop.permute.xlu1 %488 }
 0x186   :  { %v601_v44 = vpop.permute.xlu0 %600  ;;  %v599_v47 = vpop.permute.xlu1 %598 }
 0x187   :  { %821 = vmatmul.mubr.msk.bf16.vlgmr.msra.gmra.mxu1 %vm269_vm2, %v377_v42  ;;  %v606_v46 = vsel %vm269_vm2, %v601_v44, 0 }
 0x188   :  { %831 = vmatpush3.bf16.xpose.msra.mxu1 %v496_v43  ;;  %832 = vmatprep.mubr.msk.bf16.mxu1 %vm1021_vm0, %v1020_v0 }
 0x189   :  { %842 = vmatprep.subr.bf16.mxu1 %v1020_v0 }
 0x18f   :  { %833 = vmatmul.mubr.msk.bf16.vlgmr.msra.gmra.mxu1 %vm269_vm2, %v489_v45 }
 0x190   :  { %843 = vmatpush3.bf16.xpose.msra.mxu1 %v606_v46  ;;  %844 = vmatprep.mubr.msk.bf16.mxu1 %vm1021_vm0, %v1020_v0 }
 0x197   :  { %845 = vmatmul.mubr.msk.bf16.vlgmr.msra.gmra.mxu1 %vm269_vm2, %v599_v47 }
 0x1d5   :  { %v310_v48 = vpop.f32.mrf.mxu1 }
 0x1d6   :  { %v316_v49 = vsel %vm269_vm2, %v310_v48, -inf }
 0x1d7   :  { %317 = vmax.xlane.f32.xlu0 %v316_v49  ;;  %v810_v50 = vpop.f32.mrf.mxu1 }
 0x1d9   :  { %v313_v51 = vpop.f32.mrf.mxu1 }
 0x1db   :  { %v811_v52 = vpop.f32.mrf.mxu1 }
 0x247   :  { %v421_v61 = vpop.f32.mrf.mxu1 }
 0x248   :  { %v427_v62 = vsel %vm269_vm2, %v421_v61, -inf }
 0x249   :  { %428 = vmax.xlane.f32.xlu1 %v427_v62  ;;  %v822_v63 = vpop.f32.mrf.mxu1 }
 0x24b   :  { %v424_v1 = vpop.f32.mrf.mxu1 }
 0x24d   :  { %v823_v2 = vpop.f32.mrf.mxu1 }
 0x24f   :  { %v532_v3 = vpop.f32.mrf.mxu1 }
 0x250   :  { %v538_v4 = vsel %vm269_vm2, %v532_v3, -inf }
 0x251   :  { %539 = vmax.xlane.f32.xlu0 %v538_v4  ;;  %v834_v5 = vpop.f32.mrf.mxu1 }
 0x253   :  { %v535_v6 = vpop.f32.mrf.mxu1 }
 0x255   :  { %v835_v7 = vpop.f32.mrf.mxu1 }
 0x257   :  { %v642_v8 = vpop.f32.mrf.mxu1 }
 0x258   :  { %v648_v9 = vsel %vm269_vm2, %v642_v8, -inf }
 0x259   :  { %649 = vmax.xlane.f32.xlu0 %v648_v9  ;;  %v846_v10 = vpop.f32.mrf.mxu1 }
 0x25a   :  { %438 = vrot.lane.b32.xlu1 %v268_v57, %s1023_s3 }
 0x25b   :  { %v645_v11 = vpop.f32.mrf.mxu1 }
 0x25d   :  { %v847_v12 = vpop.f32.mrf.mxu1 }
 0x25e   :  { %658 = vrot.lane.b32.xlu1 %v268_v57, %s1024_s5 }
 0x260   :  { %v318_v13 = vpop.xlane.xlu0 %317 }
 0x261   :  { %v319_v14 = vsub.f32 %v310_v48, %v318_v13 }
 0x263   :  { %v320_v15 = vmul.f32 1.442695, %v319_v14 }
 0x265   :  { %869 = vpow2.f32 %v320_v15 }
 0x26f   :  { %548 = vrot.lane.b32.xlu0 %v268_v57, %s1022_s9 }
 0x272   :  { %v870_v16 = vpop.eup %869 }
 0x273   :  { %v325_v17 = vpack.c.bf16 %v870_v16, %v870_v16  ;;  %v322_v34 = vsel %vm269_vm2, %v870_v16, 0.0 }
 0x275   :  { %815 = vmatmul.mubr.msk.bf16.vlgmr.msra.gmra.mxu0 %vm269_vm2, %v325_v17 }
 0x276   :  { %826 = vmatprep.mubr.msk.bf16.mxu0 %vm1021_vm0, %v1020_v0 }
 0x2d2   :  { %v429_v18 = vpop.xlane.xlu1 %428 }
 0x2d3   :  { %v430_v19 = vsub.f32 %v421_v61, %v429_v18 }
 0x2d5   :  { %v431_v20 = vmul.f32 1.442695, %v430_v19 }
 0x2d6   :  { %v439_v21 = vpop.permute.xlu1 %438 }
 0x2d7   :  { %871 = vpow2.f32 %v431_v20  ;;  %v444_v22 = vsel %vm329_vm3, %v439_v21, 0 }
 0x2d8   :  { %825 = vmatpush3.bf16.msra.mxu0 %v444_v22 }
 0x2d9   :  { %836 = vmatprep.subr.bf16.mxu0 %v1020_v0 }
 0x2da   :  { %v540_v23 = vpop.xlane.xlu0 %539  ;;  %v659_v36 = vpop.permute.xlu1 %658 }
 0x2db   :  { %v541_v24 = vsub.f32 %v532_v3, %v540_v23  ;;  %v664_v39 = vsel %vm329_vm3, %v659_v36, 0 }
 0x2dd   :  { %v542_v25 = vmul.f32 1.442695, %v541_v24 }
 0x2df   :  { %873 = vpow2.f32 %v542_v25 }
 0x2e2   :  { %v650_v26 = vpop.xlane.xlu0 %649 }
 0x2e3   :  { %v651_v27 = vsub.f32 %v642_v8, %v650_v26 }
 0x2e4   :  { %v872_v28 = vpop.eup %871 }
 0x2e5   :  { %v652_v29 = vmul.f32 1.442695, %v651_v27  ;;  %v433_v30 = vsel %vm269_vm2, %v872_v28, 0.0  ;;  %v436_v31 = vpack.c.bf16 %v872_v28, %v872_v28 }
 0x2e6   :  { %v549_v32 = vpop.permute.xlu0 %548  ;;  %434 = vadd.xlane.f32.xlu1 %v433_v30 }
 0x2e7   :  { %875 = vpow2.f32 %v652_v29  ;;  %v554_v33 = vsel %vm329_vm3, %v549_v32, 0  ;;  %827 = vmatmul.mubr.msk.bf16.vlgmr.msra.gmra.mxu0 %vm269_vm2, %v436_v31 }
 0x2e8   :  { %837 = vmatpush3.bf16.msra.mxu0 %v554_v33  ;;  %838 = vmatprep.mubr.msk.bf16.mxu0 %vm1021_vm0, %v1020_v0 }
 0x2e9   :  { %848 = vmatprep.subr.bf16.mxu0 %v1020_v0 }
 0x2ea   :  { %323 = vadd.xlane.f32.xlu1 %v322_v34 }
 0x2ec   :  { %v874_v35 = vpop.eup %873 }
 0x2ed   :  { %v544_v37 = vsel %vm269_vm2, %v874_v35, 0.0  ;;  %v547_v38 = vpack.c.bf16 %v874_v35, %v874_v35 }
 0x2ee   :  { %545 = vadd.xlane.f32.xlu0 %v544_v37 }
 0x2ef   :  { %839 = vmatmul.mubr.msk.bf16.vlgmr.msra.gmra.mxu0 %vm269_vm2, %v547_v38 }
 0x2f0   :  { %849 = vmatpush3.bf16.msra.mxu0 %v664_v39  ;;  %850 = vmatprep.mubr.msk.bf16.mxu0 %vm1021_vm0, %v1020_v0 }
 0x2f4   :  { %v876_v40 = vpop.eup %875 }
 0x2f5   :  { %v654_v41 = vsel %vm269_vm2, %v876_v40, 0.0  ;;  %v657_v42 = vpack.c.bf16 %v876_v40, %v876_v40 }
 0x2f6   :  { %655 = vadd.xlane.f32.xlu0 %v654_v41 }
 0x2f7   :  { %851 = vmatmul.mubr.msk.bf16.vlgmr.msra.gmra.mxu0 %vm269_vm2, %v657_v42 }
 0x335   :  { %v367_v43 = vpop.f32.mrf.mxu0 }
 0x337   :  { %v816_v44 = vpop.f32.mrf.mxu0 }
 0x339   :  { %v370_v45 = vpop.f32.mrf.mxu0 }
 0x33b   :  { %v817_v46 = vpop.f32.mrf.mxu0 }
 0x36f   :  { %v435_v47 = vpop.xlane.xlu1 %434 }
 0x370   :  { %877 = vrcp.f32 %v435_v47 }
 0x373   :  { %v324_v4 = vpop.xlane.xlu1 %323 }
 0x377   :  { %v546_v48 = vpop.xlane.xlu0 %545 }
 0x378   :  { %879 = vrcp.f32 %v546_v48 }
 0x37d   :  { %v878_v49 = vpop.eup %877 }
 0x37f   :  { %v656_v50 = vpop.xlane.xlu0 %655 }
 0x380   :  { %881 = vrcp.f32 %v656_v50 }
 0x381   :  { %883 = vrcp.f32 %v324_v4 }
 0x385   :  { %v880_v55 = vpop.eup %879 }
 0x38d   :  { %v882_v61 = vpop.eup %881 }
 0x38e   :  { %v884_v5 = vpop.eup %883 }
 0x38f   :  { %v374_v8 = vmul.f32 %v884_v5, %v367_v43 }
 0x3a7   :  { %v480_v51 = vpop.f32.mrf.mxu0 }
 0x3a8   :  { %v487_v52 = vmul.f32 %v878_v49, %v480_v51 }
 0x3a9   :  { %v828_v0 = vpop.f32.mrf.mxu0 }
 0x3aa   :  { %709 = vrot.lane.b32.xlu0 %v487_v52, %s1017_s16 }
 0x3ab   :  { %v483_v53 = vpop.f32.mrf.mxu0 }
 0x3ad   :  { %v829_v54 = vpop.f32.mrf.mxu0 }
 0x3af   :  { %v590_v56 = vpop.f32.mrf.mxu0 }
 0x3b0   :  { %v597_v57 = vmul.f32 %v880_v55, %v590_v56 }
 0x3b1   :  { %v840_v58 = vpop.f32.mrf.mxu0 }
 0x3b2   :  { %713 = vrot.lane.b32.xlu1 %v597_v57, %s1025_s7 }
 0x3b3   :  { %v593_v59 = vpop.f32.mrf.mxu0 }
 0x3b5   :  { %v841_v60 = vpop.f32.mrf.mxu0 }
 0x3b7   :  { %v700_v62 = vpop.f32.mrf.mxu0 }
 0x3b8   :  { %v707_v63 = vmul.f32 %v882_v61, %v700_v62 }
 0x3b9   :  { %v852_v1 = vpop.f32.mrf.mxu0 }
 0x3ba   :  { %717 = vrot.lane.b32.xlu1 %v707_v63, %s1026_s12 }
 0x3bb   :  { %v703_v2 = vpop.f32.mrf.mxu0 }
 0x3bd   :  { %v853_v3 = vpop.f32.mrf.mxu0 }
 0x41c   :  { %v710_v6 = vpop.permute.xlu0 %709 }
 0x41d   :  { %v720_v9 = vsel %vm269_vm2, %v374_v8, %v710_v6 }
 0x424   :  { %v714_v7 = vpop.permute.xlu1 %713 }
 0x425   :  { %v722_v10 = vsel %vm721_vm4, %v720_v9, %v714_v7 }
 0x42c   :  { %v718_v11 = vpop.permute.xlu1 %717 }
 0x42d   :  { %v724_v12 = vsel %vm723_vm5, %v722_v10, %v718_v11 }
 0x42e   :  { %725 = vst.msk [vmem:[#allocation11] sm:$0xff] %vm112_vm1, %v724_v12 }
 0x42f   :  { %996 = shalt.err (!%p993_p1)
}
 0x430   :  { %735 = dma.vmem_to_hbm [thread:$0]  %s733_s14, 128, %s1192_s8, [#allocation4]  }
 0x431   :  { %1011 = dma.done.wait [#allocation4], 128  }
 0x432   :  { %1012 = vsyncadd [#allocation4], 4294967168 }
 0x433   :  { %739 = vsyncpa [#allocation3], 1 }
 0x434   :  { %740 = vsyncpa [#allocation6], 1 }
 0x435   :  { %741 = vsyncpa [#allocation9], 1 }
 0x436   :  { %742 = vsyncpa [#allocation4], 1 }

</bundles_post_ra>
